<compile_context>
chip_gen: v5e
topology: v5e:2x2
jax: 0.10.0
libtpu: 0.0.40
codegen_flags: <defaults>
</compile_context>

<pallas_src>
from functools import partial

import jax
import jax.numpy as jnp
from jax.experimental import pallas as pl
from jax.experimental.pallas import tpu as pltpu


def mlp_kernel(x_ref, w1_ref, b1_ref, w2_ref, b2_ref, o_ref):
    # Layer 1: x @ W1 on the MXU with f32 accumulation; bias + ReLU on the VPU
    # in f32 (b1 is (1, H) and broadcasts over rows).
    h = jnp.dot(x_ref[...], w1_ref[...], preferred_element_type=jnp.float32)
    h = jnp.maximum(h + b1_ref[...], 0.0)
    # Layer 2: cast hidden acts to the weight dtype (bf16) for the MXU,
    # accumulate in f32, bias-add in f32, store lane-dense f32.
    y = jnp.dot(h.astype(w2_ref.dtype), w2_ref[...],
                preferred_element_type=jnp.float32)
    o_ref[...] = (y + b2_ref[...]).astype(o_ref.dtype)


def _round_up(x, m):
    return (x + m - 1) // m * m


def _pad2d(a, rows, cols):
    """Zero-pad a 2-D array up to (rows, cols); no-op if already that shape."""
    if a.shape == (rows, cols):
        return a
    return jnp.zeros((rows, cols), a.dtype).at[:a.shape[0], :a.shape[1]].set(a)


@partial(jax.jit, static_argnames=("tm",))
def dense_forward(x, w1, b1, w2, b2, *, tm=128):
    """y = relu(x @ w1 + b1) @ w2 + b2 (nn.Linear semantics, W pre-transposed).

    x:  [B, F_in]   (bf16 recommended)
    w1: [F_in, H]   b1: [H] or [1, H]
    w2: [H, F_out]  b2: [F_out] or [1, F_out]
    Returns f32 [B, F_out].
    """
    B, F_in = x.shape
    H = w1.shape[1]
    F_out = w2.shape[1]
    b1 = b1.reshape(1, -1).astype(jnp.float32)
    b2 = b2.reshape(1, -1).astype(jnp.float32)

    # Lane-dense feature dims (multiples of 128), sublane-aligned batch tile.
    Fi = _round_up(F_in, 128)
    Hp = _round_up(H, 128)
    Fo = _round_up(F_out, 128)
    tm = min(tm, _round_up(B, 8))
    Bp = _round_up(B, tm)

    xp = _pad2d(x, Bp, Fi)
    w1p = _pad2d(w1, Fi, Hp)
    b1p = _pad2d(b1, 1, Hp)
    w2p = _pad2d(w2, Hp, Fo)
    b2p = _pad2d(b2, 1, Fo)

    out = pl.pallas_call(
        mlp_kernel,
        out_shape=jax.ShapeDtypeStruct((Bp, Fo), jnp.float32),
        grid=(Bp // tm,),
        in_specs=[
            # Activations stream per batch tile.
            pl.BlockSpec((tm, Fi), lambda i: (i, 0)),
            # Weights / biases: constant index_map -> VMEM-resident across grid.
            pl.BlockSpec((Fi, Hp), lambda i: (0, 0)),
            pl.BlockSpec((1, Hp), lambda i: (0, 0)),
            pl.BlockSpec((Hp, Fo), lambda i: (0, 0)),
            pl.BlockSpec((1, Fo), lambda i: (0, 0)),
        ],
        out_specs=pl.BlockSpec((tm, Fo), lambda i: (i, 0)),
        compiler_params=pltpu.CompilerParams(
            dimension_semantics=("parallel",)),
    )(xp, w1p, b1p, w2p, b2p)

    # Slice off padding (zero-padded weight/bias columns contribute exactly 0).
    return out[:B, :F_out]


if __name__ == "__main__":
    key = jax.random.PRNGKey(0)
    kx, k1, k2 = jax.random.split(key, 3)

    # Small RL-style MLP shapes: batch of transitions x (obs -> hidden -> actions).
    B, F_in, H, F_out = 64, 24, 64, 6

    x_f32 = jax.random.normal(kx, (B, F_in), dtype=jnp.float32)
    w1_f32 = (jax.random.uniform(k1, (F_in, H), jnp.float32, -1.0, 1.0)
              * (1.0 / jnp.sqrt(F_in)))
    b1 = jnp.full((H,), 0.01, jnp.float32)
    w2_f32 = (jax.random.uniform(k2, (H, F_out), jnp.float32, -1.0, 1.0)
              * (1.0 / jnp.sqrt(H)))
    b2 = jnp.full((F_out,), -0.02, jnp.float32)

    # bf16 storage / MXU operand dtype; biases + accumulation stay f32.
    x = x_f32.astype(jnp.bfloat16)
    w1 = w1_f32.astype(jnp.bfloat16)
    w2 = w2_f32.astype(jnp.bfloat16)

    out = dense_forward(x, w1, b1, w2, b2, tm=128)
    out = jax.block_until_ready(out)

    # Plain-JAX reference using the same bf16-rounded operands / hidden acts.
    xr = x.astype(jnp.float32)
    w1r = w1.astype(jnp.float32)
    w2r = w2.astype(jnp.float32)
    h_ref = jnp.maximum(xr @ w1r + b1, 0.0)
    h_ref = h_ref.astype(jnp.bfloat16).astype(jnp.float32)
    ref = h_ref @ w2r + b2

    assert out.shape == (B, F_out)
    assert jnp.allclose(out, ref, atol=1e-2, rtol=1e-2), "mismatch vs reference"

    print("KERNEL_OK")
</pallas_src>

<mosaic_0001>
module attributes {stable_mosaic.version = 11 : i64} {
  func.func @mlp_kernel(%arg0: i32, %arg1: memref<64x128xbf16, #tpu.memory_space<vmem>>, %arg2: memref<128x128xbf16, #tpu.memory_space<vmem>>, %arg3: memref<1x128xf32, #tpu.memory_space<vmem>>, %arg4: memref<128x128xbf16, #tpu.memory_space<vmem>>, %arg5: memref<1x128xf32, #tpu.memory_space<vmem>>, %arg6: memref<64x128xf32, #tpu.memory_space<vmem>>) attributes {dimension_semantics = [#tpu.dimension_semantics<parallel>], iteration_bounds = array<i64: 1>, scalar_prefetch = 0 : i64, scratch_operands = 0 : i64, tpu.core_type = #tpu.core_type<tc>, window_params = [{transform_indices = @transform_0, window_bounds = array<i64: 64, 128>}, {pipeline_mode = #tpu.pipeline_mode<synchronous>, transform_indices = @transform_1, window_bounds = array<i64: 128, 128>}, {pipeline_mode = #tpu.pipeline_mode<synchronous>, transform_indices = @transform_2, window_bounds = array<i64: 1, 128>}, {pipeline_mode = #tpu.pipeline_mode<synchronous>, transform_indices = @transform_3, window_bounds = array<i64: 128, 128>}, {pipeline_mode = #tpu.pipeline_mode<synchronous>, transform_indices = @transform_4, window_bounds = array<i64: 1, 128>}, {transform_indices = @transform_5, window_bounds = array<i64: 64, 128>}]} {
    %c0 = arith.constant 0 : index
    %c0_0 = arith.constant 0 : index
    %0 = vector.load %arg1[%c0, %c0_0] : memref<64x128xbf16, #tpu.memory_space<vmem>>, vector<64x128xbf16>
    %c0_1 = arith.constant 0 : index
    %c0_2 = arith.constant 0 : index
    %1 = vector.load %arg2[%c0_1, %c0_2] : memref<128x128xbf16, #tpu.memory_space<vmem>>, vector<128x128xbf16>
    %cst = arith.constant dense<0.000000e+00> : vector<64x128xf32>
    %2 = tpu.matmul %0, %1, %cst {dimension_numbers = #tpu.dot_dimension_numbers<[1], [0], [0], [1], [0, 0, 1, 1], [], []>} : vector<64x128xbf16>, vector<128x128xbf16>, vector<64x128xf32> -> vector<64x128xf32>
    %c0_3 = arith.constant 0 : index
    %c0_4 = arith.constant 0 : index
    %3 = vector.load %arg3[%c0_3, %c0_4] : memref<1x128xf32, #tpu.memory_space<vmem>>, vector<1x128xf32>
    %4 = vector.broadcast %3 : vector<1x128xf32> to vector<64x128xf32>
    %5 = arith.addf %2, %4 : vector<64x128xf32>
    %cst_5 = arith.constant 0.000000e+00 : f32
    %6 = vector.broadcast %cst_5 : f32 to vector<64x128xf32>
    %7 = arith.maximumf %5, %6 : vector<64x128xf32>
    %8 = arith.truncf %7 : vector<64x128xf32> to vector<64x128xbf16>
    %c0_6 = arith.constant 0 : index
    %c0_7 = arith.constant 0 : index
    %9 = vector.load %arg4[%c0_6, %c0_7] : memref<128x128xbf16, #tpu.memory_space<vmem>>, vector<128x128xbf16>
    %cst_8 = arith.constant dense<0.000000e+00> : vector<64x128xf32>
    %10 = tpu.matmul %8, %9, %cst_8 {dimension_numbers = #tpu.dot_dimension_numbers<[1], [0], [0], [1], [0, 0, 1, 1], [], []>} : vector<64x128xbf16>, vector<128x128xbf16>, vector<64x128xf32> -> vector<64x128xf32>
    %c0_9 = arith.constant 0 : index
    %c0_10 = arith.constant 0 : index
    %11 = vector.load %arg5[%c0_9, %c0_10] : memref<1x128xf32, #tpu.memory_space<vmem>>, vector<1x128xf32>
    %12 = vector.broadcast %11 : vector<1x128xf32> to vector<64x128xf32>
    %13 = arith.addf %10, %12 : vector<64x128xf32>
    %c0_11 = arith.constant 0 : index
    %c0_12 = arith.constant 0 : index
    %14 = vector.load %arg6[%c0_11, %c0_12] : memref<64x128xf32, #tpu.memory_space<vmem>>, vector<64x128xf32>
    tpu.vector_store %arg6[%c0_11, %c0_12], %13 {strides = array<i32>} : memref<64x128xf32, #tpu.memory_space<vmem>>, vector<64x128xf32>,
    return
  }
  func.func @transform_0(%arg0: i32) -> (i32, i32) {
    %c0_i32 = arith.constant 0 : i32
    %c0_i32_0 = arith.constant 0 : i32
    return %arg0, %c0_i32 : i32, i32
  }
  func.func @transform_1(%arg0: i32) -> (i32, i32) {
    %c0_i32 = arith.constant 0 : i32
    %c0_i32_0 = arith.constant 0 : i32
    %c0_i32_1 = arith.constant 0 : i32
    return %c0_i32, %c0_i32_0 : i32, i32
  }
  func.func @transform_2(%arg0: i32) -> (i32, i32) {
    %c0_i32 = arith.constant 0 : i32
    %c0_i32_0 = arith.constant 0 : i32
    %c0_i32_1 = arith.constant 0 : i32
    return %c0_i32, %c0_i32_0 : i32, i32
  }
  func.func @transform_3(%arg0: i32) -> (i32, i32) {
    %c0_i32 = arith.constant 0 : i32
    %c0_i32_0 = arith.constant 0 : i32
    %c0_i32_1 = arith.constant 0 : i32
    return %c0_i32, %c0_i32_0 : i32, i32
  }
  func.func @transform_4(%arg0: i32) -> (i32, i32) {
    %c0_i32 = arith.constant 0 : i32
    %c0_i32_0 = arith.constant 0 : i32
    %c0_i32_1 = arith.constant 0 : i32
    return %c0_i32, %c0_i32_0 : i32, i32
  }
  func.func @transform_5(%arg0: i32) -> (i32, i32) {
    %c0_i32 = arith.constant 0 : i32
    %c0_i32_0 = arith.constant 0 : i32
    return %arg0, %c0_i32 : i32, i32
  }
}

</mosaic_0001>

<bundles_post_ra>
// kernel: dense_forward.1
= control target key start
LH: loop header
LB: loop body
LE: loop exit
PB: predicated region body
PF: predicated region fallthrough
CT: control target
= control target key end

     0   :  { %s508_s1 = inlined_call_operand.vmem [shape: bf16[128,128], index: 1, kind: input, shape index: {}]   ;;  %s509_s2 = inlined_call_operand.vmem [shape: f32[1,128], index: 2, kind: input, shape index: {}]   ;;  %s510_s3 = inlined_call_operand.vmem [shape: bf16[128,128], index: 3, kind: input, shape index: {}]   ;;  %s511_s0 = inlined_call_operand.vmem [shape: bf16[64,128], index: 0, kind: input, shape index: {}]   ;;  %s512_s4 = inlined_call_operand.vmem [shape: f32[1,128], index: 4, kind: input, shape index: {}]   ;;  %s513_s5 = inlined_call_operand.vmem [shape: f32[64,128], index: 5, kind: output, shape index: {}]  }
   0x1   :  { %v361_v0 = vld [vmem:[%s508_s1 + $0x38] sm:$0xff]  ;;  %v360_v1 = vld [vmem:[%s508_s1 + $0x30] sm:$0xff]  ;;  %v359_v2 = vld [vmem:[%s508_s1 + $0x28] sm:$0xff] }
   0x2   :  { %120 = vmatpush.bf16.msra.mxu0 %v361_v0  ;;  %370 = vmatpush.bf16.msra.mxu2 %v361_v0  ;;  %v358_v3 = vld [vmem:[%s508_s1 + $0x20] sm:$0xff]  ;;  %v357_v4 = vld [vmem:[%s508_s1 + $0x18] sm:$0xff]  ;;  %v356_v6 = vld [vmem:[%s508_s1 + $0x10] sm:$0xff] }
   0x3   :  { %v369_v5 = vld [vmem:[%s510_s3 + $0x38] sm:$0xff]  ;;  %v368_v7 = vld [vmem:[%s510_s3 + $0x30] sm:$0xff]  ;;  %v355_v8 = vld [vmem:[%s508_s1 + $0x8] sm:$0xff] }
   0x4   :  { %229 = vmatpush.bf16.msra.mxu1 %v369_v5  ;;  %378 = vmatpush.bf16.msra.mxu3 %v369_v5  ;;  %v367_v9 = vld [vmem:[%s510_s3 + $0x28] sm:$0xff]  ;;  %v354_v10 = vld [vmem:[%s508_s1] sm:$0xff]  ;;  %v352_v13 = vld [vmem:[%s511_s0 + $0x10] sm:$0xff] }
   0x5   :  { %v366_v11 = vld [vmem:[%s510_s3 + $0x20] sm:$0xff]  ;;  %v351_v14 = vld [vmem:[%s511_s0 + $0x8] sm:$0xff]  ;;  %v353_v15 = vld [vmem:[%s511_s0 + $0x18] sm:$0xff] }
   0x6   :  { %121 = vmatpush.bf16.msra.mxu0 %v360_v1  ;;  %371 = vmatpush.bf16.msra.mxu2 %v360_v1  ;;  %v350_v12 = vld [vmem:[%s511_s0] sm:$0xff]  ;;  %v365_v16 = vld [vmem:[%s510_s3 + $0x18] sm:$0xff]  ;;  %v364_v17 = vld [vmem:[%s510_s3 + $0x10] sm:$0xff] }
   0x7   :  { %v363_v18 = vld [vmem:[%s510_s3 + $0x8] sm:$0xff]  ;;  %v362_v19 = vld [vmem:[%s510_s3] sm:$0xff] }
   0x8   :  { %230 = vmatpush.bf16.msra.mxu1 %v368_v7  ;;  %379 = vmatpush.bf16.msra.mxu3 %v368_v7  ;;  %v386_v21 = vld [vmem:[%s509_s2] ss:$0 sm:$0xff] }
   0x9   :  { %v387_v49 = vld [vmem:[%s512_s4] ss:$0 sm:$0xff] }
   0xa   :  { %122 = vmatpush.bf16.msra.mxu0 %v359_v2  ;;  %372 = vmatpush.bf16.msra.mxu2 %v359_v2 }
   0xc   :  { %231 = vmatpush.bf16.msra.mxu1 %v367_v9  ;;  %380 = vmatpush.bf16.msra.mxu3 %v367_v9 }
   0xe   :  { %123 = vmatpush.bf16.msra.mxu0 %v358_v3  ;;  %373 = vmatpush.bf16.msra.mxu2 %v358_v3 }
  0x10   :  { %232 = vmatpush.bf16.msra.mxu1 %v366_v11  ;;  %381 = vmatpush.bf16.msra.mxu3 %v366_v11 }
  0x12   :  { %124 = vmatpush.bf16.msra.mxu0 %v357_v4  ;;  %374 = vmatpush.bf16.msra.mxu2 %v357_v4 }
  0x14   :  { %233 = vmatpush.bf16.msra.mxu1 %v365_v16  ;;  %382 = vmatpush.bf16.msra.mxu3 %v365_v16 }
  0x16   :  { %125 = vmatpush.bf16.msra.mxu0 %v356_v6  ;;  %375 = vmatpush.bf16.msra.mxu2 %v356_v6 }
  0x18   :  { %234 = vmatpush.bf16.msra.mxu1 %v364_v17  ;;  %383 = vmatpush.bf16.msra.mxu3 %v364_v17 }
  0x1a   :  { %126 = vmatpush.bf16.msra.mxu0 %v355_v8  ;;  %376 = vmatpush.bf16.msra.mxu2 %v355_v8 }
  0x1c   :  { %235 = vmatpush.bf16.msra.mxu1 %v363_v18  ;;  %384 = vmatpush.bf16.msra.mxu3 %v363_v18 }
  0x1e   :  { %127 = vmatpush.bf16.msra.mxu0 %v354_v10  ;;  %377 = vmatpush.bf16.msra.mxu2 %v354_v10 }
  0x20   :  { %236 = vmatpush.bf16.msra.mxu1 %v362_v19  ;;  %385 = vmatpush.bf16.msra.mxu3 %v362_v19 }
  0x21   :  { %128 = vmatmul.bf16.vlgmr.msra.gmra.mxu0 %v350_v12  ;;  %138 = vmatmul.bf16.vlgmr.msra.gmra.mxu2 %v352_v13 }
  0x31   :  { %133 = vmatmul.bf16.gmra.mxu0 %v351_v14  ;;  %143 = vmatmul.bf16.gmra.mxu2 %v353_v15 }
  0x9e   :  { %v129_v20 = vpop.f32.mrf.mxu0 }
  0x9f   :  { %v130_v22 = vadd.f32 %v386_v21, %v129_v20 }
  0xa1   :  { %v149_v25 = vmax.f32 %v130_v22, 0.0 }
  0xa4   :  { %v139_v23 = vpop.f32.mrf.mxu2 }
  0xa5   :  { %v140_v28 = vadd.f32 %v386_v21, %v139_v23 }
  0xa6   :  { %v131_v24 = vpop.f32.mrf.mxu0 }
  0xa7   :  { %v132_v26 = vadd.f32 %v386_v21, %v131_v24  ;;  %v153_v33 = vmax.f32 %v140_v28, 0.0 }
  0xa9   :  { %v150_v27 = vmax.f32 %v132_v26, 0.0 }
  0xab   :  { %v157_v29 = vpack.c.bf16 %v150_v27, %v149_v25 }
  0xac   :  { %v141_v30 = vpop.f32.mrf.mxu2 }
  0xad   :  { %v142_v31 = vadd.f32 %v386_v21, %v141_v30  ;;  %237 = vmatmul.bf16.vlgmr.msra.gmra.mxu1 %v157_v29 }
  0xae   :  { %v134_v32 = vpop.f32.mrf.mxu0 }
  0xaf   :  { %v154_v34 = vmax.f32 %v142_v31, 0.0  ;;  %v135_v36 = vadd.f32 %v386_v21, %v134_v32 }
  0xb1   :  { %v159_v35 = vpack.c.bf16 %v154_v34, %v153_v33  ;;  %v151_v39 = vmax.f32 %v135_v36, 0.0 }
  0xb3   :  { %247 = vmatmul.bf16.vlgmr.msra.gmra.mxu3 %v159_v35 }
  0xb4   :  { %v144_v37 = vpop.f32.mrf.mxu2 }
  0xb5   :  { %v145_v42 = vadd.f32 %v386_v21, %v144_v37 }
  0xb6   :  { %v136_v38 = vpop.f32.mrf.mxu0 }
  0xb7   :  { %v137_v40 = vadd.f32 %v386_v21, %v136_v38  ;;  %v155_v46 = vmax.f32 %v145_v42, 0.0 }
  0xb9   :  { %v152_v41 = vmax.f32 %v137_v40, 0.0 }
  0xbb   :  { %v158_v43 = vpack.c.bf16 %v152_v41, %v151_v39 }
  0xbc   :  { %v146_v44 = vpop.f32.mrf.mxu2 }
  0xbd   :  { %v147_v45 = vadd.f32 %v386_v21, %v146_v44  ;;  %242 = vmatmul.bf16.gmra.mxu1 %v158_v43 }
  0xbf   :  { %v156_v47 = vmax.f32 %v147_v45, 0.0 }
  0xc1   :  { %v160_v48 = vpack.c.bf16 %v156_v47, %v155_v46 }
  0xc3   :  { %252 = vmatmul.bf16.gmra.mxu3 %v160_v48 }
 0x12a   :  { %v238_v50 = vpop.f32.mrf.mxu1 }
 0x12b   :  { %v239_v51 = vadd.f32 %v387_v49, %v238_v50 }
 0x12d   :  { %258 = vst [vmem:[%s513_s5] sm:$0xff] %v239_v51 }
 0x132   :  { %v240_v52 = vpop.f32.mrf.mxu1 }
 0x133   :  { %v241_v53 = vadd.f32 %v387_v49, %v240_v52 }
 0x135   :  { %259 = vst [vmem:[%s513_s5 + $0x8] sm:$0xff] %v241_v53 }
 0x136   :  { %v248_v54 = vpop.f32.mrf.mxu3 }
 0x137   :  { %v249_v55 = vadd.f32 %v387_v49, %v248_v54 }
 0x139   :  { %262 = vst [vmem:[%s513_s5 + $0x20] sm:$0xff] %v249_v55 }
 0x13a   :  { %v243_v56 = vpop.f32.mrf.mxu1 }
 0x13b   :  { %v244_v57 = vadd.f32 %v387_v49, %v243_v56 }
 0x13d   :  { %260 = vst [vmem:[%s513_s5 + $0x10] sm:$0xff] %v244_v57 }
 0x13e   :  { %v250_v58 = vpop.f32.mrf.mxu3 }
 0x13f   :  { %v251_v59 = vadd.f32 %v387_v49, %v250_v58 }
 0x141   :  { %263 = vst [vmem:[%s513_s5 + $0x28] sm:$0xff] %v251_v59 }
 0x142   :  { %v245_v60 = vpop.f32.mrf.mxu1 }
 0x143   :  { %v246_v61 = vadd.f32 %v387_v49, %v245_v60 }
 0x145   :  { %261 = vst [vmem:[%s513_s5 + $0x18] sm:$0xff] %v246_v61 }
 0x146   :  { %v253_v62 = vpop.f32.mrf.mxu3 }
 0x147   :  { %v254_v63 = vadd.f32 %v387_v49, %v253_v62 }
 0x149   :  { %264 = vst [vmem:[%s513_s5 + $0x30] sm:$0xff] %v254_v63 }
 0x14e   :  { %v255_v0 = vpop.f32.mrf.mxu3 }
 0x14f   :  { %v256_v1 = vadd.f32 %v387_v49, %v255_v0 }
 0x151   :  { %265 = vst [vmem:[%s513_s5 + $0x38] sm:$0xff] %v256_v1 }

</bundles_post_ra>
